<compile_context>
chip_gen: v6e
topology: v6e:2x2x1
jax: 0.10.0
libtpu: 0.0.40
codegen_flags: <defaults>
</compile_context>

<pallas_src>
import jax
import jax.numpy as jnp
from jax.experimental import pallas as pl
from jax.experimental.pallas import tpu as pltpu


# ----------------------------------------------------------------------------
# forward(): identity pass-through (no kernel — zero data movement)
# ----------------------------------------------------------------------------
def condition_attn_forward(prompt_emd, prompt_mask, condition_emds, **kwargs):
    """Matches ConditionAttn.forward: returns prompt_emd unchanged.

    prompt_mask / condition_emds are intentionally unused, exactly like the
    PyTorch module.
    """
    return prompt_emd


# ----------------------------------------------------------------------------
# _obtain_cond_batch hot path, fused:
#   out[:, off_t:off_t+C_t, :] = cond_emd_t (+ cond_type_emds[t])
# Single pallas_call; per-type sizes / slab offsets are Python-static, so the
# "concatenate" is free (each type writes its own static slice of the slab).
# ----------------------------------------------------------------------------
def _make_fused_cond_kernel(c_sizes, use_cond_type_emd):
    """Build a kernel closed over the static per-type sizes / slab offsets."""
    offsets = []
    off = 0
    for c in c_sizes:
        offsets.append(off)
        off += c

    def kernel(*refs):
        if use_cond_type_emd:
            type_ref = refs[0]            # [T, D] embedding table
            cond_refs = refs[1:-1]        # per-type [B, C_t, D]
        else:
            type_ref = None
            cond_refs = refs[:-1]
        out_ref = refs[-1]                # [B, C_total, D]

        # Load the (tiny) type-embedding table once; static row picks below
        # are pure vreg selects, no repeated VMEM traffic.
        table = type_ref[...] if use_cond_type_emd else None

        for t, (cref, c, start) in enumerate(zip(cond_refs, c_sizes, offsets)):
            x = cref[...]                                  # [B, C_t, D]
            if use_cond_type_emd:
                row = table[t:t + 1, :]                    # [1, D] static row
                x = x + row[None, :, :]                    # -> [B, C_t, D]
            # Static slice into the output slab = fused "concatenate".
            out_ref[:, start:start + c, :] = x.astype(out_ref.dtype)

    return kernel


def obtain_cond_batch(cond_types, cond_type_emds, condition_emds,
                      use_cond_type_emd=None):
    """Mirror of ConditionAttn._obtain_cond_batch (add type emb + concat)."""
    if use_cond_type_emd is None:
        # Same rule as the PyTorch module.
        use_cond_type_emd = len(cond_types) > 1

    cond_list = [condition_emds[ct]["emd"] for ct in cond_types]
    mask_list = [condition_emds[ct]["mask"] for ct in cond_types]
    c_sizes = tuple(int(e.shape[1]) for e in cond_list)
    B, _, D = cond_list[0].shape
    C_total = int(sum(c_sizes))
    dtype = cond_list[0].dtype

    kernel = _make_fused_cond_kernel(c_sizes, use_cond_type_emd)
    args = ([cond_type_emds] if use_cond_type_emd else []) + cond_list

    # Whole-array VMEM blocks, empty grid.  Condition counts are tiny here;
    # if B * C_total * D ever grows toward VMEM capacity (esp. v7x 64 MiB),
    # switch to a grid over B with (1, C_t, D) blocks instead.
    in_specs = [pl.BlockSpec(memory_space=pltpu.MemorySpace.VMEM)
                for _ in args]
    out_specs = pl.BlockSpec(memory_space=pltpu.MemorySpace.VMEM)

    cond_batch = pl.pallas_call(
        kernel,
        out_shape=jax.ShapeDtypeStruct((B, C_total, D), dtype),
        in_specs=in_specs,
        out_specs=out_specs,
    )(*args)

    # TODO(synk): mask concat is a tiny [B, C_total] bool op; left to XLA
    # (bool outputs from Mosaic are not worth the risk for ~bytes of data).
    cond_mask_batch = jnp.concatenate(mask_list, axis=1)
    return cond_batch, cond_mask_batch


# ----------------------------------------------------------------------------
# Demo / self-test
# ----------------------------------------------------------------------------
if __name__ == "__main__":
    key = jax.random.PRNGKey(0)

    # Synthetic "config": two condition types -> use_cond_type_emd = True
    cond_types = ["goal", "motion_tag"]
    hidden_dim = 32
    B, N = 2, 8
    C_per_type = {"goal": 4, "motion_tag": 6}

    k_prompt, k_emd_tab, k_g, k_m = jax.random.split(key, 4)

    # Parameters: nn.Embedding(len(cond_types), hidden_dim) weight table.
    cond_type_emds = jax.random.normal(
        k_emd_tab, (len(cond_types), hidden_dim), dtype=jnp.float32)

    # Inputs
    prompt_emd = jax.random.normal(k_prompt, (B, N, hidden_dim),
                                   dtype=jnp.float32)
    prompt_mask = jnp.ones((B, N), dtype=jnp.bool_)

    condition_emds = {}
    for ct, k in zip(cond_types, [k_g, k_m]):
        C = C_per_type[ct]
        condition_emds[ct] = {
            "emd": jax.random.normal(k, (B, C, hidden_dim),
                                     dtype=jnp.float32),
            "mask": jnp.ones((B, C), dtype=jnp.bool_),
            "prompt_idx": jnp.zeros((B, C, 1), dtype=jnp.int32),
        }

    # ---- forward(): identity pass-through (no kernel, no data movement) ----
    out = condition_attn_forward(prompt_emd, prompt_mask, condition_emds)
    out = jax.block_until_ready(out)
    assert out.shape == prompt_emd.shape and out.dtype == prompt_emd.dtype
    assert jnp.array_equal(out, prompt_emd), "forward must be identity"

    # ---- _obtain_cond_batch: fused add+concat kernel vs pure-JAX ref ----
    cond_batch, cond_mask_batch = obtain_cond_batch(
        cond_types, cond_type_emds, condition_emds)
    cond_batch = jax.block_until_ready(cond_batch)

    ref_batch = jnp.concatenate(
        [condition_emds[ct]["emd"] + cond_type_emds[i][None, None, :]
         for i, ct in enumerate(cond_types)], axis=1)
    ref_mask = jnp.concatenate(
        [condition_emds[ct]["mask"] for ct in cond_types], axis=1)

    assert cond_batch.shape == (B, sum(C_per_type.values()), hidden_dim)
    assert jnp.allclose(cond_batch, ref_batch, atol=1e-6)
    assert jnp.array_equal(cond_mask_batch, ref_mask)

    # ---- single-condition-type path (use_cond_type_emd = False) ----
    single_batch, single_mask = obtain_cond_batch(
        ["goal"], cond_type_emds, condition_emds)
    single_batch = jax.block_until_ready(single_batch)
    assert jnp.allclose(single_batch, condition_emds["goal"]["emd"], atol=1e-6)
    assert jnp.array_equal(single_mask, condition_emds["goal"]["mask"])

    print("KERNEL_OK")
</pallas_src>

<mosaic_0001>
module attributes {stable_mosaic.version = 11 : i64} {
  func.func @kernel(%arg0: memref<2x32xf32, #tpu.memory_space<vmem>>, %arg1: memref<2x4x32xf32, #tpu.memory_space<vmem>>, %arg2: memref<2x6x32xf32, #tpu.memory_space<vmem>>, %arg3: memref<2x10x32xf32, #tpu.memory_space<vmem>>) attributes {dimension_semantics = [], scalar_prefetch = 0 : i64, scratch_operands = 0 : i64, tpu.core_type = #tpu.core_type<tc>} {
    %c0 = arith.constant 0 : index
    %c0_0 = arith.constant 0 : index
    %0 = vector.load %arg0[%c0, %c0_0] : memref<2x32xf32, #tpu.memory_space<vmem>>, vector<2x32xf32>
    %c0_1 = arith.constant 0 : index
    %c0_2 = arith.constant 0 : index
    %c0_3 = arith.constant 0 : index
    %1 = vector.load %arg1[%c0_1, %c0_2, %c0_3] : memref<2x4x32xf32, #tpu.memory_space<vmem>>, vector<2x4x32xf32>
    %2 = vector.extract_strided_slice %0 {offsets = [0, 0], sizes = [1, 32], strides = [1, 1]} : vector<2x32xf32> to vector<1x32xf32>
    %3 = vector.shape_cast %2 : vector<1x32xf32> to vector<1x1x32xf32>
    %4 = vector.broadcast %3 : vector<1x1x32xf32> to vector<2x4x32xf32>
    %5 = arith.addf %1, %4 : vector<2x4x32xf32>
    %c0_4 = arith.constant 0 : index
    %c0_5 = arith.constant 0 : index
    %c0_6 = arith.constant 0 : index
    %6 = vector.load %arg3[%c0_4, %c0_5, %c0_6] : memref<2x10x32xf32, #tpu.memory_space<vmem>>, vector<2x4x32xf32>
    tpu.vector_store %arg3[%c0_4, %c0_5, %c0_6], %5 {strides = array<i32>} : memref<2x10x32xf32, #tpu.memory_space<vmem>>, vector<2x4x32xf32>,
    %c0_7 = arith.constant 0 : index
    %c0_8 = arith.constant 0 : index
    %c0_9 = arith.constant 0 : index
    %7 = vector.load %arg2[%c0_7, %c0_8, %c0_9] : memref<2x6x32xf32, #tpu.memory_space<vmem>>, vector<2x6x32xf32>
    %8 = vector.extract_strided_slice %0 {offsets = [1, 0], sizes = [1, 32], strides = [1, 1]} : vector<2x32xf32> to vector<1x32xf32>
    %9 = vector.shape_cast %8 : vector<1x32xf32> to vector<1x1x32xf32>
    %10 = vector.broadcast %9 : vector<1x1x32xf32> to vector<2x6x32xf32>
    %11 = arith.addf %7, %10 : vector<2x6x32xf32>
    %c0_10 = arith.constant 0 : index
    %c4 = arith.constant 4 : index
    %c0_11 = arith.constant 0 : index
    %12 = vector.load %arg3[%c0_10, %c4, %c0_11] : memref<2x10x32xf32, #tpu.memory_space<vmem>>, vector<2x6x32xf32>
    tpu.vector_store %arg3[%c0_10, %c4, %c0_11], %11 {strides = array<i32>} : memref<2x10x32xf32, #tpu.memory_space<vmem>>, vector<2x6x32xf32>,
    return
  }
}

</mosaic_0001>

<bundles_post_ra>
// kernel: tpu_custom_call.1
= control target key start
LH: loop header
LB: loop body
LE: loop exit
PB: predicated region body
PF: predicated region fallthrough
CT: control target
= control target key end

     0   :  { %v17_v0 = vlaneseq  ;;  %vm23_vm0 = vcmask 257024   ;;  %vm34_vm1 = vcmask 259072   ;;  %s88_s0 = inlined_call_operand.vmem [shape: f32[2,32], index: 0, kind: input, shape index: {}]   ;;  %s89_s1 = inlined_call_operand.vmem [shape: f32[2,4,32], index: 1, kind: input, shape index: {}]   ;;  %s90_s2 = inlined_call_operand.vmem [shape: f32[2,6,32], index: 2, kind: input, shape index: {}]   ;;  %s91_s3 = inlined_call_operand.vmem [shape: f32[2,10,32], index: 3, kind: output, shape index: {}]  }
   0x1   :  { %v14_v2 = vld [vmem:[%s88_s0] sm:$0x3]  ;;  %v16_v6 = vld [vmem:[%s89_s1 + $0x4] sm:$0xf]  ;;  %v27_v8 = vld [vmem:[%s90_s2 + $0x8] sm:$0x3f] }
   0x2   :  { %v18_v1 = vshrl.u32 %v17_v0, 7  ;;  %v15_v3 = vld [vmem:[%s89_s1] sm:$0xf] }
   0x3   :  { %v26_v7 = vld [vmem:[%s90_s2] sm:$0x3f] }
   0x4   :  { %v19_v4 = vsub.s32 0, %v18_v1  ;;  %v30_v5 = vsub.s32 1, %v18_v1 }
   0x6   :  { %v20_v9 = vrot.slane %v14_v2, %v19_v4  ;;  %v31_v10 = vrot.slane %v14_v2, %v30_v5 }
   0x8   :  { %v21_v11 = vadd.f32 %v20_v9, %v15_v3  ;;  %v22_v12 = vadd.f32 %v20_v9, %v16_v6  ;;  %v32_v13 = vadd.f32 %v31_v10, %v26_v7  ;;  %v33_v14 = vadd.f32 %v31_v10, %v27_v8 }
   0xa   :  { %24 = vst.msk [vmem:[%s91_s3] sm:$0xf] %vm23_vm0, %v21_v11  ;;  %25 = vst.msk [vmem:[%s91_s3 + $0x10] sm:$0xf] %vm23_vm0, %v22_v12 }
   0xb   :  { %35 = vst.msk [vmem:[%s91_s3 + $0x4] sm:$0x3f] %vm34_vm1, %v32_v13  ;;  %36 = vst.msk [vmem:[%s91_s3 + $0x14] sm:$0x3f] %vm34_vm1, %v33_v14 }

</bundles_post_ra>
